<compile_context>
chip_gen: v7x
topology: tpu7x:2x2x1
jax: 0.10.0
libtpu: 0.0.40
codegen_flags: <defaults>
</compile_context>

<pallas_src>
import functools

import jax
import jax.numpy as jnp
from jax import lax
from jax.experimental import pallas as pl
from jax.experimental.pallas import tpu as pltpu

_LANE = 128
_BF16_SUBLANE = 16          # a bf16 vreg holds [16, 128] -> pad batch to 16
_BN_EPS = 1e-5


def _round_up(x, m):
    return (x + m - 1) // m * m


def _vmem_capacity_bytes():
    try:
        cap = getattr(pltpu.get_tpu_info(), "vmem_capacity_bytes", None)
        if cap:
            return int(cap)
    except Exception:
        pass
    return 64 * 1024 * 1024   # conservative fallback (v7x physical VMEM)


def _pick_tk(h_in):
    """K (H_in) tile: single step for small H_in, otherwise 512-wide slabs."""
    if h_in <= 1024:
        return h_in, h_in
    tk = 512
    return tk, _round_up(h_in, tk)


def _pick_tn(b_pad, h_pad):
    """Feature tile: lane multiple, VMEM-aware, >= 2 tiles when possible
    (so dimension_semantics='parallel' actually uses both v7x TensorCores)."""
    acc_cap_bytes = 4 * 1024 * 1024            # cap on the live f32 y tile
    max_tn = max(_LANE, (acc_cap_bytes // (b_pad * 4)) // _LANE * _LANE)
    tn = _LANE
    for cand in (1024, 512, 256, 128):
        if cand <= max_tn and h_pad % cand == 0:
            tn = cand
            break
    if h_pad // tn < 2 and h_pad >= 2 * _LANE and (h_pad // 2) % _LANE == 0:
        tn = h_pad // 2
    return tn


def _fcblock_kernel(x_ref, w_ref, gb_ref, o_ref, acc_ref, *, inv_n):
    """One (feature-tile, K-tile) grid step of Linear -> BatchNorm1d -> ReLU.

    K is the innermost 'arbitrary' reduction axis: partial products accumulate
    into the f32 VMEM scratch; the BN + ReLU epilogue runs on the last K step.
    The Linear bias is intentionally omitted (BN's mean subtraction cancels it).
    """
    k = pl.program_id(1)

    @pl.when(k == 0)
    def _():
        acc_ref[...] = jnp.zeros_like(acc_ref)

    # MXU matmul: bf16 operands, f32 accumulation.
    acc_ref[...] += jnp.dot(x_ref[...], w_ref[...],
                            preferred_element_type=jnp.float32)

    @pl.when(k == pl.num_programs(1) - 1)
    def _():
        y = acc_ref[...]                                       # (B_pad, tn) f32
        # Single-pass batch statistics.  Padded batch rows of y are exactly
        # zero (zero-padded x, no bias), so plain column sums with
        # inv_n = 1/B_real are exact -- no row mask needed.
        sum_y = jnp.sum(y, axis=0, keepdims=True)
        sum_y2 = jnp.sum(y * y, axis=0, keepdims=True)
        mean = sum_y * inv_n
        var = jnp.maximum(sum_y2 * inv_n - mean * mean, 0.0)   # biased variance
        inv_std = lax.rsqrt(var + _BN_EPS)

        # Fold BN affine into one scale/shift, then ReLU.
        gb = gb_ref[...]                                       # (2, tn) f32
        a = gb[0:1, :] * inv_std                               # gamma * inv_std
        c = gb[1:2, :] - mean * a                              # beta - mean * a
        o_ref[...] = jnp.maximum(y * a + c, 0.0).astype(o_ref.dtype)


def prepare_fcblock_params(w, b, gamma, beta):
    """One-time parameter preparation (hoisted out of the forward hot path).

    w: (H_in, H_out) == PyTorch fc.weight.T.  Returns padded bf16 weight and a
    packed (2, H_pad) f32 [gamma; beta] array.

    The Linear bias `b` is accepted for API parity but intentionally dropped:
    training-mode BatchNorm subtracts the batch mean of the Linear output, so
    the bias cancels exactly in the block's forward output.
    """
    del b
    H_in, H_out = w.shape
    H_pad = _round_up(H_out, _LANE)
    _, H_in_pad = _pick_tk(H_in)

    w_bf = jnp.pad(w.astype(jnp.bfloat16),
                   ((0, H_in_pad - H_in), (0, H_pad - H_out)))
    gb = jnp.stack([jnp.asarray(gamma, jnp.float32),
                    jnp.asarray(beta, jnp.float32)], axis=0)    # (2, H_out)
    gb = jnp.pad(gb, ((0, 0), (0, H_pad - H_out)))
    return {"w": w_bf, "gb": gb, "H_in": H_in, "H_out": H_out,
            "H_in_pad": H_in_pad, "H_pad": H_pad}


def fcblock_forward(x, params, *, out_dtype=jnp.float32):
    """x: (B, H_in) f32 (or bf16).  Returns (B, H_out) in out_dtype
    (pass jnp.bfloat16 on bandwidth-poor v5e to halve output writeback)."""
    B, H_in = x.shape
    assert H_in == params["H_in"], "hidden size mismatch"
    H_out, H_pad = params["H_out"], params["H_pad"]
    H_in_pad = params["H_in_pad"]

    # TODO(synk): very large batches would additionally need batch tiling of the
    # BN statistics (two-pass reduction); not needed at these shapes.
    B_pad = _round_up(B, _BF16_SUBLANE)
    tn = _pick_tn(B_pad, H_pad)
    tk, _ = _pick_tk(H_in)

    x_bf = x.astype(jnp.bfloat16)
    if (B_pad != B) or (H_in_pad != H_in):
        x_bf = jnp.pad(x_bf, ((0, B_pad - B), (0, H_in_pad - H_in)))

    grid = (H_pad // tn, H_in_pad // tk)

    out_itemsize = jnp.dtype(out_dtype).itemsize
    vmem_bytes = (
        2 * B_pad * tk * 2                 # x tile (bf16, double-buffered)
        + 2 * tk * tn * 2                  # w tile (bf16)
        + 2 * 2 * tn * 4                   # packed gamma/beta tile (f32)
        + 2 * B_pad * tn * out_itemsize    # output tile
        + B_pad * tn * 4                   # f32 accumulator scratch
    )
    vmem_limit = min(max(int(vmem_bytes * 1.25), 32 * 1024 * 1024),
                     _vmem_capacity_bytes())

    kernel = functools.partial(_fcblock_kernel, inv_n=1.0 / B)

    out = pl.pallas_call(
        kernel,
        out_shape=jax.ShapeDtypeStruct((B_pad, H_pad), out_dtype),
        grid=grid,
        in_specs=[
            pl.BlockSpec((B_pad, tk), lambda j, k: (0, k)),   # x: full batch, K slab
            pl.BlockSpec((tk, tn), lambda j, k: (k, j)),      # weight tile
            pl.BlockSpec((2, tn), lambda j, k: (0, j)),       # packed gamma/beta
        ],
        out_specs=pl.BlockSpec((B_pad, tn), lambda j, k: (0, j)),
        scratch_shapes=[pltpu.VMEM((B_pad, tn), jnp.float32)],
        compiler_params=pltpu.CompilerParams(
            dimension_semantics=("parallel", "arbitrary"),
            vmem_limit_bytes=vmem_limit,
        ),
    )(x_bf, params["w"], params["gb"])

    return out[:B, :H_out]


if __name__ == "__main__":
    key = jax.random.PRNGKey(0)
    B, H = 8, 32  # batch, num_hidden

    kx, kw, kb = jax.random.split(key, 3)
    x = jax.random.normal(kx, (B, H), dtype=jnp.float32)

    # Mimic nn.Linear's uniform(-1/sqrt(H), 1/sqrt(H)) init; W stored as (in, out).
    bound = 1.0 / (H ** 0.5)
    w = jax.random.uniform(kw, (H, H), dtype=jnp.float32, minval=-bound, maxval=bound)
    b = jax.random.uniform(kb, (H,), dtype=jnp.float32, minval=-bound, maxval=bound)
    gamma = jnp.ones((H,), dtype=jnp.float32)   # BatchNorm1d weight init
    beta = jnp.zeros((H,), dtype=jnp.float32)   # BatchNorm1d bias init

    params = prepare_fcblock_params(w, b, gamma, beta)   # one-time prep
    out = fcblock_forward(x, params)
    jax.block_until_ready(out)

    # Reference 1: matched precision (bf16 matmul operands, f32 acc + f32 BN).
    # Includes the bias: BN's mean subtraction must cancel it exactly.
    y = jnp.dot(x.astype(jnp.bfloat16), w.astype(jnp.bfloat16),
                preferred_element_type=jnp.float32) + b[None, :]
    mean = y.mean(axis=0, keepdims=True)
    var = ((y - mean) ** 2).mean(axis=0, keepdims=True)
    ref = jnp.maximum(
        gamma[None, :] * (y - mean) * lax.rsqrt(var + _BN_EPS) + beta[None, :], 0.0)
    assert jnp.allclose(out, ref, atol=2e-3, rtol=2e-3), "mismatch vs matched-precision ref"

    # Reference 2: full-f32 (exact PyTorch-semantics) reference, loose tolerance
    # for the bf16 matmul operands.
    y32 = x @ w + b[None, :]
    m32 = y32.mean(axis=0, keepdims=True)
    v32 = ((y32 - m32) ** 2).mean(axis=0, keepdims=True)
    ref32 = jnp.maximum(
        gamma[None, :] * (y32 - m32) / jnp.sqrt(v32 + _BN_EPS) + beta[None, :], 0.0)
    assert jnp.allclose(out, ref32, atol=5e-2, rtol=5e-2), "mismatch vs f32 reference"

    print("KERNEL_OK")
</pallas_src>

<mosaic_0001>
module attributes {stable_mosaic.version = 11 : i64} {
  func.func @_fcblock_kernel(%arg0: i32, %arg1: i32, %arg2: memref<16x32xbf16, #tpu.memory_space<vmem>>, %arg3: memref<32x128xbf16, #tpu.memory_space<vmem>>, %arg4: memref<2x128xf32, #tpu.memory_space<vmem>>, %arg5: memref<16x128xf32, #tpu.memory_space<vmem>>, %arg6: memref<16x128xf32, #tpu.memory_space<vmem>>) attributes {dimension_semantics = [#tpu.dimension_semantics<parallel>, #tpu.dimension_semantics<arbitrary>], iteration_bounds = array<i64: 1, 1>, scalar_prefetch = 0 : i64, scratch_operands = 1 : i64, tpu.core_type = #tpu.core_type<tc>, window_params = [{transform_indices = @transform_0, window_bounds = array<i64: 16, 32>}, {transform_indices = @transform_1, window_bounds = array<i64: 32, 128>}, {transform_indices = @transform_2, window_bounds = array<i64: 2, 128>}, {transform_indices = @transform_3, window_bounds = array<i64: 16, 128>}]} {
    %c0_i32 = arith.constant 0 : i32
    %0 = arith.cmpi eq, %arg1, %c0_i32 : i32
    %1 = arith.extui %0 : i1 to i32
    %c0_i32_0 = arith.constant 0 : i32
    %2 = arith.cmpi ne, %1, %c0_i32_0 : i32
    scf.if %2 {
      %cst_10 = arith.constant 0.000000e+00 : f32
      %12 = vector.broadcast %cst_10 : f32 to vector<16x128xf32>
      %c0_11 = arith.constant 0 : index
      %c0_12 = arith.constant 0 : index
      %13 = vector.load %arg6[%c0_11, %c0_12] : memref<16x128xf32, #tpu.memory_space<vmem>>, vector<16x128xf32>
      tpu.vector_store %arg6[%c0_11, %c0_12], %12 {strides = array<i32>} : memref<16x128xf32, #tpu.memory_space<vmem>>, vector<16x128xf32>,
    } else {
    }
    %c0 = arith.constant 0 : index
    %c0_1 = arith.constant 0 : index
    %3 = vector.load %arg6[%c0, %c0_1] : memref<16x128xf32, #tpu.memory_space<vmem>>, vector<16x128xf32>
    %c0_2 = arith.constant 0 : index
    %c0_3 = arith.constant 0 : index
    %4 = vector.load %arg2[%c0_2, %c0_3] : memref<16x32xbf16, #tpu.memory_space<vmem>>, vector<16x32xbf16>
    %c0_4 = arith.constant 0 : index
    %c0_5 = arith.constant 0 : index
    %5 = vector.load %arg3[%c0_4, %c0_5] : memref<32x128xbf16, #tpu.memory_space<vmem>>, vector<32x128xbf16>
    %cst = arith.constant dense<0.000000e+00> : vector<16x128xf32>
    %6 = tpu.matmul %4, %5, %cst {dimension_numbers = #tpu.dot_dimension_numbers<[1], [0], [0], [1], [0, 0, 1, 1], [], []>} : vector<16x32xbf16>, vector<32x128xbf16>, vector<16x128xf32> -> vector<16x128xf32>
    %7 = arith.addf %3, %6 : vector<16x128xf32>
    %c0_6 = arith.constant 0 : index
    %c0_7 = arith.constant 0 : index
    %8 = vector.load %arg6[%c0_6, %c0_7] : memref<16x128xf32, #tpu.memory_space<vmem>>, vector<16x128xf32>
    tpu.vector_store %arg6[%c0_6, %c0_7], %7 {strides = array<i32>} : memref<16x128xf32, #tpu.memory_space<vmem>>, vector<16x128xf32>,
    %c0_i32_8 = arith.constant 0 : i32
    %9 = arith.cmpi eq, %arg1, %c0_i32_8 : i32
    %10 = arith.extui %9 : i1 to i32
    %c0_i32_9 = arith.constant 0 : i32
    %11 = arith.cmpi ne, %10, %c0_i32_9 : i32
    scf.if %11 {
      %c0_10 = arith.constant 0 : index
      %c0_11 = arith.constant 0 : index
      %12 = vector.load %arg6[%c0_10, %c0_11] : memref<16x128xf32, #tpu.memory_space<vmem>>, vector<16x128xf32>
      %cst_12 = arith.constant dense<0.000000e+00> : vector<128xf32>
      %13 = vector.multi_reduction <add>, %12, %cst_12 [0] : vector<16x128xf32> to vector<128xf32>
      %14 = vector.shape_cast %13 : vector<128xf32> to vector<1x128xf32>
      %15 = arith.mulf %12, %12 : vector<16x128xf32>
      %cst_13 = arith.constant dense<0.000000e+00> : vector<128xf32>
      %16 = vector.multi_reduction <add>, %15, %cst_13 [0] : vector<16x128xf32> to vector<128xf32>
      %17 = vector.shape_cast %16 : vector<128xf32> to vector<1x128xf32>
      %cst_14 = arith.constant 1.250000e-01 : f32
      %18 = vector.broadcast %cst_14 : f32 to vector<1x128xf32>
      %19 = arith.mulf %14, %18 : vector<1x128xf32>
      %cst_15 = arith.constant 1.250000e-01 : f32
      %20 = vector.broadcast %cst_15 : f32 to vector<1x128xf32>
      %21 = arith.mulf %17, %20 : vector<1x128xf32>
      %22 = arith.mulf %19, %19 : vector<1x128xf32>
      %23 = arith.subf %21, %22 : vector<1x128xf32>
      %cst_16 = arith.constant 0.000000e+00 : f32
      %24 = vector.broadcast %cst_16 : f32 to vector<1x128xf32>
      %25 = arith.maximumf %23, %24 : vector<1x128xf32>
      %cst_17 = arith.constant 9.99999974E-6 : f32
      %26 = vector.broadcast %cst_17 : f32 to vector<1x128xf32>
      %27 = arith.addf %25, %26 : vector<1x128xf32>
      %28 = math.rsqrt %27 : vector<1x128xf32>
      %c0_18 = arith.constant 0 : index
      %c0_19 = arith.constant 0 : index
      %29 = vector.load %arg4[%c0_18, %c0_19] : memref<2x128xf32, #tpu.memory_space<vmem>>, vector<2x128xf32>
      %30 = vector.extract_strided_slice %29 {offsets = [0, 0], sizes = [1, 128], strides = [1, 1]} : vector<2x128xf32> to vector<1x128xf32>
      %31 = arith.mulf %30, %28 : vector<1x128xf32>
      %32 = vector.extract_strided_slice %29 {offsets = [1, 0], sizes = [1, 128], strides = [1, 1]} : vector<2x128xf32> to vector<1x128xf32>
      %33 = arith.mulf %19, %31 : vector<1x128xf32>
      %34 = arith.subf %32, %33 : vector<1x128xf32>
      %35 = vector.broadcast %31 : vector<1x128xf32> to vector<16x128xf32>
      %36 = arith.mulf %12, %35 : vector<16x128xf32>
      %37 = vector.broadcast %34 : vector<1x128xf32> to vector<16x128xf32>
      %38 = arith.addf %36, %37 : vector<16x128xf32>
      %cst_20 = arith.constant 0.000000e+00 : f32
      %39 = vector.broadcast %cst_20 : f32 to vector<16x128xf32>
      %40 = arith.maximumf %38, %39 : vector<16x128xf32>
      %c0_21 = arith.constant 0 : index
      %c0_22 = arith.constant 0 : index
      %41 = vector.load %arg5[%c0_21, %c0_22] : memref<16x128xf32, #tpu.memory_space<vmem>>, vector<16x128xf32>
      tpu.vector_store %arg5[%c0_21, %c0_22], %40 {strides = array<i32>} : memref<16x128xf32, #tpu.memory_space<vmem>>, vector<16x128xf32>,
    } else {
    }
    return
  }
  func.func @transform_0(%arg0: i32, %arg1: i32) -> (i32, i32) {
    %c0_i32 = arith.constant 0 : i32
    %c0_i32_0 = arith.constant 0 : i32
    return %c0_i32, %arg1 : i32, i32
  }
  func.func @transform_1(%arg0: i32, %arg1: i32) -> (i32, i32) {
    %c0_i32 = arith.constant 0 : i32
    return %arg1, %arg0 : i32, i32
  }
  func.func @transform_2(%arg0: i32, %arg1: i32) -> (i32, i32) {
    %c0_i32 = arith.constant 0 : i32
    %c0_i32_0 = arith.constant 0 : i32
    return %c0_i32, %arg0 : i32, i32
  }
  func.func @transform_3(%arg0: i32, %arg1: i32) -> (i32, i32) {
    %c0_i32 = arith.constant 0 : i32
    %c0_i32_0 = arith.constant 0 : i32
    return %c0_i32, %arg0 : i32, i32
  }
}

</mosaic_0001>

<bundles_post_ra>
// kernel: tpu_custom_call.1
= control target key start
LH: loop header
LB: loop body
LE: loop exit
PB: predicated region body
PF: predicated region fallthrough
CT: control target
= control target key end

     0   :  { %8 = vsyncpa [#allocation4], 0  ;;  %s362_s0 = inlined_call_operand.hbm [shape: bf16[16,32], index: 0, kind: input, shape index: {}]   ;;  %s363_s1 = inlined_call_operand.hbm [shape: bf16[32,128], index: 1, kind: input, shape index: {}]   ;;  %s364_s2 = inlined_call_operand.vmem [shape: f32[2,128], index: 2, kind: input, shape index: {}]   ;;  %s365_s3 = inlined_call_operand.hbm [shape: f32[16,128], index: 3, kind: output, shape index: {}]  }
   0x1   :  { %9 = vsyncpa [#allocation7], 0 }
   0x2   :  { %10 = vsyncpa [#allocation5], 0  ;;  %s294_s12 = smov [#allocation3]   ;;  %s222_s16 = scalar_lea.hbm %s362_s0, 128 }
   0x3   :  { %s16_s13 = sshll.u32 %s294_s12, 4  ;;  %p223_p0 = scmp.ne.s32.totalorder %s362_s0, %s222_s16  ;;  %s17_s13 = int_to_ptr.vmem [resolvable:$true] %s16_s13 }
   0x4   :  { %p226_p1 = scmp.lt.u32.totalorder %s222_s16, %s362_s0 }
   0x6   :  { %p228_p2 = pnand %p226_p1, %p223_p0 }
   0x8   :  { %231 = shalt.err (!%p228_p2)
}
   0x9   :  { %s232_s21 = scalar_lea.vmem %s17_s13, 128  ;;  %p237_p4 = scmp.lt.s32.totalorder %s17_s13, %s17_s13 }
   0xa   :  { %p233_p3 = scmp.ne.s32.totalorder %s17_s13, %s232_s21  ;;  %p238_p5 = scmp.lt.s32.totalorder %s232_s21, %s232_s21 }
   0xc   :  { %p239_p6 = por %p238_p5, %p237_p4 }
   0xe   :  { %p240_p7 = pnand %p239_p6, %p233_p3 }
  0x10   :  { %243 = shalt.err (!%p240_p7)
}
  0x11   :  { %s295_s22 = smov 64   ;;  %s296_s23 = smov 4  }
  0x12   :  { %22 = dma.hbm_to_vmem [thread:$0]  %s362_s0, 128, %s17_s13, [#allocation4], %s295_s22, %s295_s22, %s296_s23  }
  0x13   :  { %s297_s26 = smov [#allocation6]   ;;  %s244_s30 = scalar_lea.hbm %s363_s1, 256 }
  0x14   :  { %s28_s27 = sshll.u32 %s297_s26, 4  ;;  %p245_p8 = scmp.ne.s32.totalorder %s363_s1, %s244_s30  ;;  %s29_s27 = int_to_ptr.vmem [resolvable:$true] %s28_s27 }
  0x15   :  { %p248_p9 = scmp.lt.u32.totalorder %s244_s30, %s363_s1 }
  0x17   :  { %p250_p10 = pnand %p248_p9, %p245_p8 }
  0x19   :  { %253 = shalt.err (!%p250_p10)
}
  0x1a   :  { %s254_s8 = scalar_lea.vmem %s29_s27, 256  ;;  %p259_p12 = scmp.lt.s32.totalorder %s29_s27, %s29_s27 }
  0x1b   :  { %p255_p11 = scmp.ne.s32.totalorder %s29_s27, %s254_s8  ;;  %p260_p13 = scmp.lt.s32.totalorder %s254_s8, %s254_s8 }
  0x1d   :  { %p261_p0 = por %p260_p13, %p259_p12 }
  0x1f   :  { %p262_p1 = pnand %p261_p0, %p255_p11 }
  0x21   :  { %265 = shalt.err (!%p262_p1)
}
  0x22   :  { %34 = dma.hbm_to_vmem [thread:$0]  %s363_s1, 256, %s29_s27, [#allocation7], %s295_s22, %s295_s22, %s296_s23  }
  0x23   :  { %288 = dma.done.wait [#allocation4], 128  }
  0x24   :  { %289 = vsyncadd [#allocation4], 4294967168 }
  0x25   :  { %290 = dma.done.wait [#allocation7], 256  }
  0x26   :  { %291 = vsyncadd [#allocation7], 4294967040  ;;  %v298_v0 = vmov 0.0   ;;  %vm299_vm0 = vmmov 0   ;;  %v217_v1 = vld [vmem:[#allocation6] sm:$0xff]   ;;  %v218_v2 = vld [vmem:[#allocation6 + $0x8] sm:$0xff]   ;;  %v159_v30 = vlaneseq }
  0x27   :  { %200 = vmatprep.subr.bf16.mxu0 %v298_v0  ;;  %204 = vmatprep.mubr.msk.bf16.mxu0 %vm299_vm0, %v298_v0  ;;  %v219_v3 = vld [vmem:[#allocation3] sm:$0xff]   ;;  %vm75_vm1 = vcmask 261120   ;;  %s300_s11 = smov [#allocation8]  }
  0x28   :  { %201 = vmatpush3.bf16.msra.mxu0 %v217_v1  ;;  %v160_v31 = vshrl.u32 %v159_v30, 7  ;;  %v152_v32 = vld [vmem:[%s364_s2] sm:$0x3]  ;;  %s180_s12 = sshll.u32 %s300_s11, 4  ;;  %s181_s12 = int_to_ptr.vmem [resolvable:$true] %s180_s12 }
  0x29   :  { %202 = vmatprep.subr.bf16.mxu0 %v298_v0  ;;  %s266_s2 = scalar_lea.vmem %s181_s12, 256  ;;  %p271_p3 = scmp.lt.s32.totalorder %s181_s12, %s181_s12 }
  0x2a   :  { %v161_v33 = vsub.s32 0, %v160_v31  ;;  %v167_v41 = vsub.s32 1, %v160_v31  ;;  %p267_p2 = scmp.ne.s32.totalorder %s181_s12, %s266_s2  ;;  %p272_p4 = scmp.lt.s32.totalorder %s266_s2, %s266_s2 }
  0x2c   :  { %203 = vmatpush3.bf16.msra.mxu0 %v218_v2  ;;  %p273_p5 = por %p272_p4, %p271_p3 }
  0x2e   :  { %p274_p6 = pnand %p273_p5, %p267_p2 }
  0x2f   :  { %205 = vmatmul.mubr.msk.bf16.vlgmr.msra.gmra.mrb[0].mxu0 %vm75_vm1, %v219_v3 }
 0x102   :  { %v113_v4 = vpop.f32.mrb[0].mxu0 }
 0x103   :  { %v206_v5 = vpop.f32.mrb[1].mxu0  ;;  %v136_v7 = vmul.f32 %v113_v4, %v113_v4 }
 0x104   :  { %v116_v6 = vpop.f32.mrb[2].mxu0 }
 0x105   :  { %v129_v8 = vadd.f32 %v116_v6, %v113_v4  ;;  %v137_v9 = vmul.f32 %v116_v6, %v116_v6  ;;  %v207_v10 = vpop.f32.mrb[3].mxu0 }
 0x107   :  { %v130_v11 = vrot.slane %v129_v8, 4  ;;  %v138_v12 = vadd.f32 %v137_v9, %v136_v7 }
 0x109   :  { %v131_v13 = vadd.f32 %v130_v11, %v129_v8  ;;  %v139_v14 = vrot.slane %v138_v12, 4 }
 0x10b   :  { %v132_v15 = vrot.slane %v131_v13, 2  ;;  %v140_v16 = vadd.f32 %v139_v14, %v138_v12 }
 0x10d   :  { %v133_v17 = vadd.f32 %v132_v15, %v131_v13  ;;  %v141_v18 = vrot.slane %v140_v16, 2 }
 0x10f   :  { %v134_v19 = vrot.slane %v133_v17, 1  ;;  %v142_v20 = vadd.f32 %v141_v18, %v140_v16 }
 0x111   :  { %v135_v21 = vadd.f32 %v134_v19, %v133_v17  ;;  %v143_v22 = vrot.slane %v142_v20, 1 }
 0x113   :  { %v144_v23 = vadd.f32 %v143_v22, %v142_v20  ;;  %v145_v24 = vmul.f32 0.125, %v135_v21 }
 0x115   :  { %v146_v25 = vmul.f32 0.125, %v144_v23  ;;  %v147_v26 = vmul.f32 %v145_v24, %v145_v24 }
 0x117   :  { %v148_v27 = vsub.f32 %v146_v25, %v147_v26 }
 0x119   :  { %v149_v28 = vmax.f32 %v148_v27, 0.0 }
 0x11b   :  { %v150_v29 = vadd.f32 1e-05, %v149_v28 }
 0x11d   :  { %220 = vrsqrt.f32 %v150_v29 }
 0x127   :  { %v221_v34 = vpop.eup %220 }
 0x128   :  { %v153_v35 = vmul.f32 %v221_v34, %v152_v32 }
 0x12a   :  { %v154_v36 = vmul.f32 %v153_v35, %v145_v24  ;;  %v162_v37 = vrot.slane %v153_v35, %v161_v33 }
 0x12c   :  { %v156_v38 = vrot.slane %v154_v36, 7  ;;  %v163_v39 = vmul.f32 %v162_v37, %v113_v4  ;;  %v164_v40 = vmul.f32 %v162_v37, %v116_v6 }
 0x12e   :  { %v158_v42 = vsub.f32 %v152_v32, %v156_v38 }
 0x130   :  { %v168_v43 = vrot.slane %v158_v42, %v167_v41 }
 0x132   :  { %v169_v44 = vadd.f32 %v168_v43, %v163_v39  ;;  %v170_v45 = vadd.f32 %v168_v43, %v164_v40 }
 0x134   :  { %v171_v46 = vmax.f32 %v169_v44, 0.0  ;;  %v172_v47 = vmax.f32 %v170_v45, 0.0 }
 0x136   :  { %174 = vst [vmem:[#allocation8 + $0x8] sm:$0xff] %v172_v47  ;;  %173 = vst [vmem:[#allocation8] sm:$0xff] %v171_v46 }
 0x137   :  { %277 = shalt.err (!%p274_p6)
}
 0x138   :  { %s278_s15 = scalar_lea.hbm %s365_s3, 256 }
 0x139   :  { %p279_p7 = scmp.ne.s32.totalorder %s365_s3, %s278_s15  ;;  %p282_p8 = scmp.lt.u32.totalorder %s278_s15, %s365_s3 }
 0x13b   :  { %p284_p9 = pnand %p282_p8, %p279_p7 }
 0x13d   :  { %287 = shalt.err (!%p284_p9)
}
 0x13e   :  { %s301_s20 = smov 128   ;;  %s302_s21 = smov 8  }
 0x13f   :  { %186 = dma.vmem_to_hbm [thread:$0]  %s181_s12, 256, %s365_s3, [#allocation5], %s301_s20, %s301_s20, %s302_s21  }
 0x140   :  { %292 = dma.done.wait [#allocation5], 256  }
 0x141   :  { %293 = vsyncadd [#allocation5], 4294967040 }
 0x142   :  { %190 = vsyncpa [#allocation4], 1 }
 0x143   :  { %191 = vsyncpa [#allocation7], 1 }
 0x144   :  { %192 = vsyncpa [#allocation5], 1 }

</bundles_post_ra>
